<compile_context>
chip_gen: v7x
topology: tpu7x:2x2x1
jax: 0.10.0
libtpu: 0.0.40
codegen_flags: <defaults>
</compile_context>

<pallas_src>
import math

import jax
import jax.numpy as jnp
from jax.experimental import pallas as pl
from jax.experimental.pallas import tpu as pltpu

EPS = 1e-12  # BERT default layer_norm_eps


def _round_up(x, m):
    return ((x + m - 1) // m) * m


# ----------------------------------------------------------------------------
# Fused LM head kernel:
#   t = LayerNorm(gelu(x @ W + b)) * gamma + beta        (computed at j == 0)
#   o = t @ E^T + decoder_bias                           (every (i, j) tile)
# ----------------------------------------------------------------------------
def fused_lm_head_kernel(x_ref, w_ref, b_ref, g_ref, beta_ref,
                         e_ref, db_ref, o_ref, t_ref):
    # x_ref: (tm, H) bf16, w_ref: (H, H) bf16, b/g/beta: (1, H) f32
    # e_ref: (tv, H) bf16, db_ref: (1, tv) f32
    # o_ref: (tm, tv) f32, t_ref (scratch): (tm, H) bf16
    @pl.when(pl.program_id(1) == 0)
    def _():
        h = jnp.dot(x_ref[...], w_ref[...], preferred_element_type=jnp.float32)
        h = h + b_ref[...]
        # exact erf-based gelu (matches the PyTorch reference gelu), in f32
        h = h * 0.5 * (1.0 + jax.lax.erf(h * (1.0 / math.sqrt(2.0))))
        mean = jnp.mean(h, axis=-1, keepdims=True)
        cent = h - mean
        var = jnp.mean(cent * cent, axis=-1, keepdims=True)
        normed = cent * jax.lax.rsqrt(var + EPS)
        t_ref[...] = (normed * g_ref[...] + beta_ref[...]).astype(t_ref.dtype)

    # decoder: contract last dims (tm, H) x (tv, H) -> (tm, tv), f32 accumulate
    o_ref[...] = jax.lax.dot_general(
        t_ref[...], e_ref[...],
        dimension_numbers=(((1,), (1,)), ((), ())),
        preferred_element_type=jnp.float32,
    ) + db_ref[...]


# ----------------------------------------------------------------------------
# Wrapper
# ----------------------------------------------------------------------------
def bert_pretraining_heads(sequence_output, pooled_output, params,
                           *, tm=256, tv=512):
    B, S, H = sequence_output.shape
    V = params["decoder_weight"].shape[0]
    M = B * S

    # Clamp tiles to the (aligned) problem size; keep (8,128)/bf16 alignment.
    tm = min(tm, _round_up(M, 16))
    tv = min(tv, _round_up(V, 128))
    Mp = _round_up(M, tm)
    Vp = _round_up(V, tv)

    # bf16 MXU inputs (halves HBM/VMEM traffic for the big (V,H) stream).
    x2d = sequence_output.reshape(M, H).astype(jnp.bfloat16)
    if Mp != M:
        x2d = jnp.pad(x2d, ((0, Mp - M), (0, 0)))
    e = params["decoder_weight"].astype(jnp.bfloat16)
    db = params["decoder_bias"].astype(jnp.float32)
    if Vp != V:
        e = jnp.pad(e, ((0, Vp - V), (0, 0)))
        db = jnp.pad(db, ((0, 0), (0, Vp - V)))
    w = params["dense_weight"].astype(jnp.bfloat16)

    grid = (Mp // tm, Vp // tv)
    scores = pl.pallas_call(
        fused_lm_head_kernel,
        out_shape=jax.ShapeDtypeStruct((Mp, Vp), jnp.float32),
        grid_spec=pltpu.PrefetchScalarGridSpec(
            num_scalar_prefetch=0,
            grid=grid,
            in_specs=[
                pl.BlockSpec((tm, H), lambda i, j: (i, 0)),   # x tile
                pl.BlockSpec((H, H), lambda i, j: (0, 0)),    # dense weight
                pl.BlockSpec((1, H), lambda i, j: (0, 0)),    # dense bias
                pl.BlockSpec((1, H), lambda i, j: (0, 0)),    # ln gamma
                pl.BlockSpec((1, H), lambda i, j: (0, 0)),    # ln beta
                pl.BlockSpec((tv, H), lambda i, j: (j, 0)),   # embedding tile
                pl.BlockSpec((1, tv), lambda i, j: (0, j)),   # decoder bias
            ],
            out_specs=pl.BlockSpec((tm, tv), lambda i, j: (i, j)),
            scratch_shapes=[pltpu.VMEM((tm, H), jnp.bfloat16)],
        ),
        compiler_params=pltpu.CompilerParams(
            # vocab axis must be sequential: the transform scratch is written
            # at j == 0 and reused for all later vocab tiles of the same i.
            dimension_semantics=("parallel", "arbitrary"),
            vmem_limit_bytes=48 << 20,   # safe on v7x's 64 MiB physical VMEM
        ),
    )(x2d, w,
      params["dense_bias"].astype(jnp.float32),
      params["ln_gamma"].astype(jnp.float32),
      params["ln_beta"].astype(jnp.float32),
      e, db)

    prediction_scores = scores[:M, :V].reshape(B, S, V)

    # seq_relationship head: O(B*H*2) FLOPs -> plain XLA matmul (a Pallas call
    # would be pure launch overhead and a 2-wide masked-store output).
    seq_relationship_score = (
        pooled_output.astype(jnp.float32) @ params["seq_weight"]
        + params["seq_bias"][0]
    )

    return prediction_scores, seq_relationship_score


# ----------------------------------------------------------------------------
# Pure-JAX reference (same bf16-input / f32-accumulate numerics as the kernel)
# ----------------------------------------------------------------------------
def reference(sequence_output, pooled_output, params):
    B, S, H = sequence_output.shape
    x = sequence_output.reshape(-1, H).astype(jnp.bfloat16)
    w = params["dense_weight"].astype(jnp.bfloat16)
    h = jnp.dot(x, w, preferred_element_type=jnp.float32)
    h = h + params["dense_bias"][0]
    h = h * 0.5 * (1.0 + jax.lax.erf(h / math.sqrt(2.0)))
    mean = jnp.mean(h, axis=-1, keepdims=True)
    var = jnp.mean((h - mean) ** 2, axis=-1, keepdims=True)
    h = ((h - mean) * jax.lax.rsqrt(var + EPS) * params["ln_gamma"][0]
         + params["ln_beta"][0])
    t = h.astype(jnp.bfloat16)
    e = params["decoder_weight"].astype(jnp.bfloat16)
    pred = jax.lax.dot_general(
        t, e, dimension_numbers=(((1,), (1,)), ((), ())),
        preferred_element_type=jnp.float32) + params["decoder_bias"][0]
    pred = pred.reshape(B, S, -1)
    seq = pooled_output @ params["seq_weight"] + params["seq_bias"][0]
    return pred, seq


if __name__ == "__main__":
    # Small shapes consistent with the module: batch=2, seq=8, hidden=128,
    # vocab=512 (dyna multipliers default to 1.0 -> plain dense layers).
    B, S, H, V = 2, 8, 128, 512

    key = jax.random.PRNGKey(0)
    ks = jax.random.split(key, 8)
    params = {
        "dense_weight":   0.02 * jax.random.normal(ks[0], (H, H), jnp.float32),
        "dense_bias":     0.02 * jax.random.normal(ks[1], (1, H), jnp.float32),
        "ln_gamma":       jnp.ones((1, H), jnp.float32),
        "ln_beta":        jnp.zeros((1, H), jnp.float32),
        "decoder_weight": 0.02 * jax.random.normal(ks[2], (V, H), jnp.float32),
        "decoder_bias":   jnp.zeros((1, V), jnp.float32),  # nn.Parameter(zeros)
        "seq_weight":     0.02 * jax.random.normal(ks[3], (H, 2), jnp.float32),
        "seq_bias":       0.02 * jax.random.normal(ks[4], (1, 2), jnp.float32),
    }

    sequence_output = jax.random.normal(ks[5], (B, S, H), jnp.float32)
    pooled_output = jax.random.normal(ks[6], (B, H), jnp.float32)

    fn = jax.jit(bert_pretraining_heads, static_argnames=("tm", "tv"))
    pred, seq = fn(sequence_output, pooled_output, params)
    jax.block_until_ready((pred, seq))

    # sanity check against pure-JAX reference (non-fatal)
    ref_pred, ref_seq = reference(sequence_output, pooled_output, params)
    if not (jnp.allclose(pred, ref_pred, atol=2e-3, rtol=2e-3)
            and jnp.allclose(seq, ref_seq, atol=2e-3, rtol=2e-3)):
        print("WARNING: mismatch vs reference")

    assert pred.shape == (B, S, V) and seq.shape == (B, 2)
    print("KERNEL_OK")
</pallas_src>

<mosaic_0001>
module attributes {stable_mosaic.version = 11 : i64} {
  func.func @fused_lm_head_kernel(%arg0: i32, %arg1: i32, %arg2: memref<16x128xbf16, #tpu.memory_space<vmem>>, %arg3: memref<128x128xbf16, #tpu.memory_space<vmem>>, %arg4: memref<1x128xf32, #tpu.memory_space<vmem>>, %arg5: memref<1x128xf32, #tpu.memory_space<vmem>>, %arg6: memref<1x128xf32, #tpu.memory_space<vmem>>, %arg7: memref<512x128xbf16, #tpu.memory_space<vmem>>, %arg8: memref<1x512xf32, #tpu.memory_space<vmem>>, %arg9: memref<16x512xf32, #tpu.memory_space<vmem>>, %arg10: memref<16x128xbf16, #tpu.memory_space<vmem>>) attributes {dimension_semantics = [#tpu.dimension_semantics<parallel>, #tpu.dimension_semantics<arbitrary>], iteration_bounds = array<i64: 1, 1>, scalar_prefetch = 0 : i64, scratch_operands = 1 : i64, tpu.core_type = #tpu.core_type<tc>, window_params = [{transform_indices = @transform_0, window_bounds = array<i64: 16, 128>}, {pipeline_mode = #tpu.pipeline_mode<synchronous>, transform_indices = @transform_1, window_bounds = array<i64: 128, 128>}, {pipeline_mode = #tpu.pipeline_mode<synchronous>, transform_indices = @transform_2, window_bounds = array<i64: 1, 128>}, {pipeline_mode = #tpu.pipeline_mode<synchronous>, transform_indices = @transform_3, window_bounds = array<i64: 1, 128>}, {pipeline_mode = #tpu.pipeline_mode<synchronous>, transform_indices = @transform_4, window_bounds = array<i64: 1, 128>}, {transform_indices = @transform_5, window_bounds = array<i64: 512, 128>}, {transform_indices = @transform_6, window_bounds = array<i64: 1, 512>}, {transform_indices = @transform_7, window_bounds = array<i64: 16, 512>}]} {
    %c0_i32 = arith.constant 0 : i32
    %0 = arith.cmpi eq, %arg1, %c0_i32 : i32
    %1 = arith.extui %0 : i1 to i32
    %c0_i32_0 = arith.constant 0 : i32
    %2 = arith.cmpi ne, %1, %c0_i32_0 : i32
    scf.if %2 {
      %c0_8 = arith.constant 0 : index
      %c0_9 = arith.constant 0 : index
      %10 = vector.load %arg2[%c0_8, %c0_9] : memref<16x128xbf16, #tpu.memory_space<vmem>>, vector<16x128xbf16>
      %c0_10 = arith.constant 0 : index
      %c0_11 = arith.constant 0 : index
      %11 = vector.load %arg3[%c0_10, %c0_11] : memref<128x128xbf16, #tpu.memory_space<vmem>>, vector<128x128xbf16>
      %cst_12 = arith.constant dense<0.000000e+00> : vector<16x128xf32>
      %12 = tpu.matmul %10, %11, %cst_12 {dimension_numbers = #tpu.dot_dimension_numbers<[1], [0], [0], [1], [0, 0, 1, 1], [], []>} : vector<16x128xbf16>, vector<128x128xbf16>, vector<16x128xf32> -> vector<16x128xf32>
      %c0_13 = arith.constant 0 : index
      %c0_14 = arith.constant 0 : index
      %13 = vector.load %arg4[%c0_13, %c0_14] : memref<1x128xf32, #tpu.memory_space<vmem>>, vector<1x128xf32>
      %14 = vector.broadcast %13 : vector<1x128xf32> to vector<16x128xf32>
      %15 = arith.addf %12, %14 : vector<16x128xf32>
      %cst_15 = arith.constant 5.000000e-01 : f32
      %16 = vector.broadcast %cst_15 : f32 to vector<16x128xf32>
      %17 = arith.mulf %15, %16 : vector<16x128xf32>
      %cst_16 = arith.constant 0.707106769 : f32
      %18 = vector.broadcast %cst_16 : f32 to vector<16x128xf32>
      %19 = arith.mulf %15, %18 : vector<16x128xf32>
      %20 = math.erf %19 : vector<16x128xf32>
      %cst_17 = arith.constant 1.000000e+00 : f32
      %21 = vector.broadcast %cst_17 : f32 to vector<16x128xf32>
      %22 = arith.addf %21, %20 : vector<16x128xf32>
      %23 = arith.mulf %17, %22 : vector<16x128xf32>
      %cst_18 = arith.constant dense<0.000000e+00> : vector<16xf32>
      %24 = vector.multi_reduction <add>, %23, %cst_18 [1] : vector<16x128xf32> to vector<16xf32>
      %25 = vector.shape_cast %24 : vector<16xf32> to vector<16x1xf32>
      %cst_19 = arith.constant 1.280000e+02 : f32
      %26 = vector.broadcast %cst_19 : f32 to vector<16x1xf32>
      %27 = arith.divf %25, %26 : vector<16x1xf32>
      %28 = vector.broadcast %27 : vector<16x1xf32> to vector<16x128xf32>
      %29 = arith.subf %23, %28 : vector<16x128xf32>
      %30 = arith.mulf %29, %29 : vector<16x128xf32>
      %cst_20 = arith.constant dense<0.000000e+00> : vector<16xf32>
      %31 = vector.multi_reduction <add>, %30, %cst_20 [1] : vector<16x128xf32> to vector<16xf32>
      %32 = vector.shape_cast %31 : vector<16xf32> to vector<16x1xf32>
      %cst_21 = arith.constant 1.280000e+02 : f32
      %33 = vector.broadcast %cst_21 : f32 to vector<16x1xf32>
      %34 = arith.divf %32, %33 : vector<16x1xf32>
      %cst_22 = arith.constant 9.99999996E-13 : f32
      %35 = vector.broadcast %cst_22 : f32 to vector<16x1xf32>
      %36 = arith.addf %34, %35 : vector<16x1xf32>
      %37 = math.rsqrt %36 : vector<16x1xf32>
      %38 = vector.broadcast %37 : vector<16x1xf32> to vector<16x128xf32>
      %39 = arith.mulf %29, %38 : vector<16x128xf32>
      %c0_23 = arith.constant 0 : index
      %c0_24 = arith.constant 0 : index
      %40 = vector.load %arg5[%c0_23, %c0_24] : memref<1x128xf32, #tpu.memory_space<vmem>>, vector<1x128xf32>
      %41 = vector.broadcast %40 : vector<1x128xf32> to vector<16x128xf32>
      %42 = arith.mulf %39, %41 : vector<16x128xf32>
      %c0_25 = arith.constant 0 : index
      %c0_26 = arith.constant 0 : index
      %43 = vector.load %arg6[%c0_25, %c0_26] : memref<1x128xf32, #tpu.memory_space<vmem>>, vector<1x128xf32>
      %44 = vector.broadcast %43 : vector<1x128xf32> to vector<16x128xf32>
      %45 = arith.addf %42, %44 : vector<16x128xf32>
      %46 = arith.truncf %45 : vector<16x128xf32> to vector<16x128xbf16>
      %c0_27 = arith.constant 0 : index
      %c0_28 = arith.constant 0 : index
      %47 = vector.load %arg10[%c0_27, %c0_28] : memref<16x128xbf16, #tpu.memory_space<vmem>>, vector<16x128xbf16>
      tpu.vector_store %arg10[%c0_27, %c0_28], %46 {strides = array<i32>} : memref<16x128xbf16, #tpu.memory_space<vmem>>, vector<16x128xbf16>,
    } else {
    }
    %c0 = arith.constant 0 : index
    %c0_1 = arith.constant 0 : index
    %3 = vector.load %arg10[%c0, %c0_1] : memref<16x128xbf16, #tpu.memory_space<vmem>>, vector<16x128xbf16>
    %c0_2 = arith.constant 0 : index
    %c0_3 = arith.constant 0 : index
    %4 = vector.load %arg7[%c0_2, %c0_3] : memref<512x128xbf16, #tpu.memory_space<vmem>>, vector<512x128xbf16>
    %cst = arith.constant dense<0.000000e+00> : vector<16x512xf32>
    %5 = tpu.matmul %3, %4, %cst {dimension_numbers = #tpu.dot_dimension_numbers<[1], [1], [0], [0], [0, 0, 1, 0], [], []>} : vector<16x128xbf16>, vector<512x128xbf16>, vector<16x512xf32> -> vector<16x512xf32>
    %c0_4 = arith.constant 0 : index
    %c0_5 = arith.constant 0 : index
    %6 = vector.load %arg8[%c0_4, %c0_5] : memref<1x512xf32, #tpu.memory_space<vmem>>, vector<1x512xf32>
    %7 = vector.broadcast %6 : vector<1x512xf32> to vector<16x512xf32>
    %8 = arith.addf %5, %7 : vector<16x512xf32>
    %c0_6 = arith.constant 0 : index
    %c0_7 = arith.constant 0 : index
    %9 = vector.load %arg9[%c0_6, %c0_7] : memref<16x512xf32, #tpu.memory_space<vmem>>, vector<16x512xf32>
    tpu.vector_store %arg9[%c0_6, %c0_7], %8 {strides = array<i32>} : memref<16x512xf32, #tpu.memory_space<vmem>>, vector<16x512xf32>,
    return
  }
  func.func @transform_0(%arg0: i32, %arg1: i32) -> (i32, i32) {
    %c0_i32 = arith.constant 0 : i32
    %c0_i32_0 = arith.constant 0 : i32
    return %arg0, %c0_i32 : i32, i32
  }
  func.func @transform_1(%arg0: i32, %arg1: i32) -> (i32, i32) {
    %c0_i32 = arith.constant 0 : i32
    %c0_i32_0 = arith.constant 0 : i32
    %c0_i32_1 = arith.constant 0 : i32
    return %c0_i32, %c0_i32_0 : i32, i32
  }
  func.func @transform_2(%arg0: i32, %arg1: i32) -> (i32, i32) {
    %c0_i32 = arith.constant 0 : i32
    %c0_i32_0 = arith.constant 0 : i32
    %c0_i32_1 = arith.constant 0 : i32
    return %c0_i32, %c0_i32_0 : i32, i32
  }
  func.func @transform_3(%arg0: i32, %arg1: i32) -> (i32, i32) {
    %c0_i32 = arith.constant 0 : i32
    %c0_i32_0 = arith.constant 0 : i32
    %c0_i32_1 = arith.constant 0 : i32
    return %c0_i32, %c0_i32_0 : i32, i32
  }
  func.func @transform_4(%arg0: i32, %arg1: i32) -> (i32, i32) {
    %c0_i32 = arith.constant 0 : i32
    %c0_i32_0 = arith.constant 0 : i32
    %c0_i32_1 = arith.constant 0 : i32
    return %c0_i32, %c0_i32_0 : i32, i32
  }
  func.func @transform_5(%arg0: i32, %arg1: i32) -> (i32, i32) {
    %c0_i32 = arith.constant 0 : i32
    %c0_i32_0 = arith.constant 0 : i32
    return %arg1, %c0_i32 : i32, i32
  }
  func.func @transform_6(%arg0: i32, %arg1: i32) -> (i32, i32) {
    %c0_i32 = arith.constant 0 : i32
    %c0_i32_0 = arith.constant 0 : i32
    return %c0_i32, %arg1 : i32, i32
  }
  func.func @transform_7(%arg0: i32, %arg1: i32) -> (i32, i32) {
    %c0_i32 = arith.constant 0 : i32
    return %arg0, %arg1 : i32, i32
  }
}

</mosaic_0001>

<bundles_post_ra>
// kernel: bert_pretraining_heads.1
= control target key start
LH: loop header
LB: loop body
LE: loop exit
PB: predicated region body
PF: predicated region fallthrough
CT: control target
= control target key end

     0   :  { %v781_v1 = vmov 0.0   ;;  %vm782_vm0 = vmmov 0   ;;  %s973_s0 = inlined_call_operand.vmem [shape: bf16[16,128], index: 0, kind: input, shape index: {}]   ;;  %s974_s1 = inlined_call_operand.vmem [shape: bf16[128,128], index: 1, kind: input, shape index: {}]   ;;  %s975_s2 = inlined_call_operand.vmem [shape: f32[1,128], index: 2, kind: input, shape index: {}]   ;;  %s976_s3 = inlined_call_operand.vmem [shape: f32[1,128], index: 3, kind: input, shape index: {}]   ;;  %s977_s4 = inlined_call_operand.vmem [shape: f32[1,128], index: 4, kind: input, shape index: {}]   ;;  %s978_s5 = inlined_call_operand.vmem [shape: bf16[512,128], index: 5, kind: input, shape index: {}]   ;;  %s979_s6 = inlined_call_operand.vmem [shape: f32[1,512], index: 6, kind: input, shape index: {}]   ;;  %s980_s7 = inlined_call_operand.hbm [shape: f32[16,512], index: 7, kind: output, shape index: {}]  }
   0x1   :  { %v708_v0 = vld [vmem:[%s974_s1] sm:$0xff]   ;;  %683 = vmatprep.subr.bf16.mxu0 %v781_v1  ;;  %v709_v2 = vld [vmem:[%s974_s1 + $0x8] sm:$0xff]   ;;  %699 = vmatprep.mubr.msk.bf16.mxu0 %vm782_vm0, %v781_v1  ;;  %v710_v3 = vld [vmem:[%s974_s1 + $0x10] sm:$0xff]  }
   0x2   :  { %684 = vmatpush3.bf16.msra.mxu0 %v708_v0  ;;  %v711_v4 = vld [vmem:[%s974_s1 + $0x18] sm:$0xff]   ;;  %v712_v5 = vld [vmem:[%s974_s1 + $0x20] sm:$0xff]   ;;  %v713_v6 = vld [vmem:[%s974_s1 + $0x28] sm:$0xff]  }
   0x3   :  { %685 = vmatprep.subr.bf16.mxu0 %v781_v1  ;;  %v714_v7 = vld [vmem:[%s974_s1 + $0x30] sm:$0xff]   ;;  %v715_v8 = vld [vmem:[%s974_s1 + $0x38] sm:$0xff]   ;;  %v716_v9 = vld [vmem:[%s973_s0] sm:$0xff]  }
   0x6   :  { %686 = vmatpush3.bf16.msra.mxu0 %v709_v2 }
   0x7   :  { %687 = vmatprep.subr.bf16.mxu0 %v781_v1 }
   0xa   :  { %688 = vmatpush3.bf16.msra.mxu0 %v710_v3 }
   0xb   :  { %689 = vmatprep.subr.bf16.mxu0 %v781_v1 }
   0xe   :  { %690 = vmatpush3.bf16.msra.mxu0 %v711_v4 }
   0xf   :  { %691 = vmatprep.subr.bf16.mxu0 %v781_v1 }
  0x12   :  { %692 = vmatpush3.bf16.msra.mxu0 %v712_v5 }
  0x13   :  { %693 = vmatprep.subr.bf16.mxu0 %v781_v1 }
  0x16   :  { %694 = vmatpush3.bf16.msra.mxu0 %v713_v6 }
  0x17   :  { %695 = vmatprep.subr.bf16.mxu0 %v781_v1 }
  0x1a   :  { %696 = vmatpush3.bf16.msra.mxu0 %v714_v7 }
  0x1b   :  { %697 = vmatprep.subr.bf16.mxu0 %v781_v1 }
  0x1e   :  { %698 = vmatpush3.bf16.msra.mxu0 %v715_v8 }
  0x1f   :  { %12 = vsyncpa [#allocation4], 0  ;;  %v594_v10 = vld [vmem:[%s975_s2] ss:$0 sm:$0xff]  ;;  %v721_v31 = vld [vmem:[%s978_s5 + $0x48] sm:$0xff]  }
  0x20   :  { %v717_v27 = vld [vmem:[%s978_s5 + $0x40] sm:$0xff]   ;;  %v722_v32 = vld [vmem:[%s978_s5 + $0xc8] sm:$0xff]   ;;  %v725_v35 = vld [vmem:[%s978_s5 + $0x50] sm:$0xff]  }
  0x21   :  { %700 = vmatmul.mubr.bf16.vlgmr.msra.gmra.mrb[0].mxu0 %v716_v9  ;;  %v718_v28 = vld [vmem:[%s978_s5 + $0xc0] sm:$0xff]   ;;  %647 = vmatprep.subr.bf16.mxu1 %v717_v27  ;;  %v723_v33 = vld [vmem:[%s978_s5 + $0x8] sm:$0xff]   ;;  %v726_v36 = vld [vmem:[%s978_s5 + $0xd0] sm:$0xff]  }
  0x22   :  { %v719_v29 = vld [vmem:[%s978_s5] sm:$0xff]   ;;  %665 = vmatprep.subr.bf16.mxu0 %v718_v28  ;;  %v724_v34 = vld [vmem:[%s978_s5 + $0x88] sm:$0xff]   ;;  %v727_v37 = vld [vmem:[%s978_s5 + $0x10] sm:$0xff]  }
  0x23   :  { %v720_v30 = vld [vmem:[%s978_s5 + $0x80] sm:$0xff]   ;;  %648 = vmatpush3.bf16.xpose.msra.mxu1 %v719_v29  ;;  %v728_v38 = vld [vmem:[%s978_s5 + $0x90] sm:$0xff]   ;;  %v729_v39 = vld [vmem:[%s978_s5 + $0x58] sm:$0xff]  }
  0x24   :  { %649 = vmatprep.subr.bf16.mxu1 %v721_v31  ;;  %v730_v40 = vld [vmem:[%s978_s5 + $0xd8] sm:$0xff]   ;;  %v733_v43 = vld [vmem:[%s978_s5 + $0x60] sm:$0xff]   ;;  %v737_v55 = vld [vmem:[%s978_s5 + $0x68] sm:$0xff]  }
  0x25   :  { %v731_v41 = vld [vmem:[%s978_s5 + $0x18] sm:$0xff]   ;;  %v734_v44 = vld [vmem:[%s978_s5 + $0xe0] sm:$0xff]   ;;  %v738_v56 = vld [vmem:[%s978_s5 + $0xe8] sm:$0xff]  }
  0x26   :  { %v732_v42 = vld [vmem:[%s978_s5 + $0x98] sm:$0xff]   ;;  %v735_v45 = vld [vmem:[%s978_s5 + $0x20] sm:$0xff]   ;;  %v739_v57 = vld [vmem:[%s978_s5 + $0x28] sm:$0xff]  }
  0x27   :  { %666 = vmatpush3.bf16.xpose.msra.mxu0 %v720_v30  ;;  %v736_v46 = vld [vmem:[%s978_s5 + $0xa0] sm:$0xff]   ;;  %v740_v58 = vld [vmem:[%s978_s5 + $0xa8] sm:$0xff]   ;;  %v741_v59 = vld [vmem:[%s978_s5 + $0x70] sm:$0xff]  }
  0x28   :  { %667 = vmatprep.subr.bf16.mxu0 %v722_v32  ;;  %v742_v60 = vld [vmem:[%s978_s5 + $0xf0] sm:$0xff]   ;;  %v745_v63 = vld [vmem:[%s978_s5 + $0x78] sm:$0xff]  }
  0x29   :  { %v743_v61 = vld [vmem:[%s978_s5 + $0x30] sm:$0xff]   ;;  %v746_v0 = vld [vmem:[%s978_s5 + $0xf8] sm:$0xff]  }
  0x2a   :  { %v744_v62 = vld [vmem:[%s978_s5 + $0xb0] sm:$0xff]   ;;  %v747_v1 = vld [vmem:[%s978_s5 + $0x38] sm:$0xff]  }
  0x2b   :  { %650 = vmatpush3.bf16.xpose.msra.mxu1 %v723_v33  ;;  %v748_v2 = vld [vmem:[%s978_s5 + $0xb8] sm:$0xff]  }
  0x2c   :  { %651 = vmatprep.subr.bf16.mxu1 %v725_v35 }
  0x2f   :  { %668 = vmatpush3.bf16.xpose.msra.mxu0 %v724_v34 }
  0x30   :  { %669 = vmatprep.subr.bf16.mxu0 %v726_v36 }
  0x33   :  { %652 = vmatpush3.bf16.xpose.msra.mxu1 %v727_v37 }
  0x34   :  { %653 = vmatprep.subr.bf16.mxu1 %v729_v39 }
  0x37   :  { %670 = vmatpush3.bf16.xpose.msra.mxu0 %v728_v38 }
  0x38   :  { %671 = vmatprep.subr.bf16.mxu0 %v730_v40 }
  0x3b   :  { %654 = vmatpush3.bf16.xpose.msra.mxu1 %v731_v41 }
  0x3c   :  { %655 = vmatprep.subr.bf16.mxu1 %v733_v43 }
  0x3f   :  { %672 = vmatpush3.bf16.xpose.msra.mxu0 %v732_v42 }
  0x40   :  { %673 = vmatprep.subr.bf16.mxu0 %v734_v44 }
  0x43   :  { %656 = vmatpush3.bf16.xpose.msra.mxu1 %v735_v45 }
  0x44   :  { %657 = vmatprep.subr.bf16.mxu1 %v737_v55 }
  0x47   :  { %674 = vmatpush3.bf16.xpose.msra.mxu0 %v736_v46 }
  0x48   :  { %675 = vmatprep.subr.bf16.mxu0 %v738_v56 }
  0x4b   :  { %658 = vmatpush3.bf16.xpose.msra.mxu1 %v739_v57 }
  0x4c   :  { %659 = vmatprep.subr.bf16.mxu1 %v741_v59 }
  0x4f   :  { %676 = vmatpush3.bf16.xpose.msra.mxu0 %v740_v58 }
  0x50   :  { %677 = vmatprep.subr.bf16.mxu0 %v742_v60 }
  0x53   :  { %660 = vmatpush3.bf16.xpose.msra.mxu1 %v743_v61 }
  0x54   :  { %661 = vmatprep.subr.bf16.mxu1 %v745_v63 }
  0x57   :  { %678 = vmatpush3.bf16.xpose.msra.mxu0 %v744_v62 }
  0x58   :  { %679 = vmatprep.subr.bf16.mxu0 %v746_v0 }
  0x5b   :  { %662 = vmatpush3.bf16.xpose.msra.mxu1 %v747_v1 }
  0x5f   :  { %680 = vmatpush3.bf16.xpose.msra.mxu0 %v748_v2 }
  0xf4   :  { %v145_v11 = vpop.f32.mrb[0].mxu0 }
  0xf5   :  { %v146_v12 = vadd.f32 %v594_v10, %v145_v11  ;;  %v701_v13 = vpop.f32.mrb[1].mxu0  ;;  %v604_v11 = vld [vmem:[%s976_s3] ss:$0 sm:$0xff] }
  0xf6   :  { %v148_v14 = vpop.f32.mrb[2].mxu0 }
  0xf7   :  { %v154_v15 = vmul.f32 0.70710677, %v146_v12  ;;  %v149_v16 = vadd.f32 %v594_v10, %v148_v14  ;;  %v702_v17 = vpop.f32.mrb[3].mxu0  ;;  %v152_v20 = vmul.f32 0.5, %v146_v12 }
  0xf9   :  { %749 = verf.f32 %v154_v15  ;;  %v155_v18 = vmul.f32 0.70710677, %v149_v16  ;;  %v153_v25 = vmul.f32 0.5, %v149_v16  ;;  %v605_v15 = vld [vmem:[%s977_s4] ss:$0 sm:$0xff]  ;;  %s783_s4 = smov [#allocation3]  }
  0xfa   :  { %s583_s11 = sshll.u32 %s783_s4, 4  ;;  %s584_s11 = int_to_ptr.vmem [resolvable:$true] %s583_s11 }
  0xfb   :  { %751 = verf.f32 %v155_v18  ;;  %p762_p1 = scmp.lt.s32.totalorder %s584_s11, %s584_s11 }
 0x103   :  { %v750_v19 = vpop.eup %749 }
 0x104   :  { %v158_v21 = vadd.f32 1.0, %v750_v19 }
 0x105   :  { %v752_v22 = vpop.eup %751 }
 0x106   :  { %v160_v23 = vmul.f32 %v158_v21, %v152_v20  ;;  %v159_v24 = vadd.f32 1.0, %v752_v22  ;;  %v272_v20 = vlaneseq }
 0x108   :  { %162 = vadd.xlane.f32.xlu0 %v160_v23  ;;  %v161_v26 = vmul.f32 %v159_v24, %v153_v25  ;;  %v273_v21 = vshrl.u32 %v272_v20, 7  ;;  %v270_v24 = vld [vmem:[%s979_s6] sm:$0xf]  ;;  %s757_s6 = scalar_lea.vmem %s584_s11, 1024 }
 0x109   :  { %p758_p0 = scmp.ne.s32.totalorder %s584_s11, %s757_s6  ;;  %p763_p2 = scmp.lt.s32.totalorder %s757_s6, %s757_s6 }
 0x10a   :  { %v274_v22 = vsub.s32 0, %v273_v21  ;;  %v278_v25 = vsub.s32 1, %v273_v21 }
 0x10b   :  { %p764_p3 = por %p763_p2, %p762_p1 }
 0x10c   :  { %164 = vadd.xlane.f32.xlu0 %v161_v26  ;;  %v275_v27 = vrot.slane %v270_v24, %v274_v22  ;;  %v279_v29 = vrot.slane %v270_v24, %v278_v25 }
 0x10d   :  { %p765_p4 = pnand %p764_p3, %p758_p0 }
 0x195   :  { %v163_v47 = vpop.xlane.xlu0 %162 }
 0x196   :  { %v167_v48 = vmul.f32 0.0078125, %v163_v47 }
 0x198   :  { %v169_v49 = vsub.f32 %v160_v23, %v167_v48  ;;  %v282_v23 = vsub.s32 2, %v273_v21 }
 0x199   :  { %v165_v50 = vpop.xlane.xlu0 %164 }
 0x19a   :  { %v168_v51 = vmul.f32 0.0078125, %v165_v50  ;;  %v171_v52 = vmul.f32 %v169_v49, %v169_v49  ;;  %v283_v28 = vrot.slane %v270_v24, %v282_v23 }
 0x19c   :  { %v170_v53 = vsub.f32 %v161_v26, %v168_v51  ;;  %173 = vadd.xlane.f32.xlu1 %v171_v52  ;;  %v286_v26 = vsub.s32 3, %v273_v21 }
 0x19e   :  { %v172_v54 = vmul.f32 %v170_v53, %v170_v53  ;;  %v287_v30 = vrot.slane %v270_v24, %v286_v26 }
 0x1a0   :  { %175 = vadd.xlane.f32.xlu1 %v172_v54 }
 0x229   :  { %v174_v3 = vpop.xlane.xlu1 %173 }
 0x22a   :  { %v177_v4 = vmul.f32 0.0078125, %v174_v3 }
 0x22c   :  { %v179_v5 = vadd.f32 1e-12, %v177_v4 }
 0x22d   :  { %v176_v6 = vpop.xlane.xlu1 %175 }
 0x22e   :  { %753 = vrsqrt.f32 %v179_v5  ;;  %v178_v7 = vmul.f32 0.0078125, %v176_v6 }
 0x230   :  { %v180_v8 = vadd.f32 1e-12, %v178_v7 }
 0x232   :  { %755 = vrsqrt.f32 %v180_v8 }
 0x238   :  { %v754_v9 = vpop.eup %753 }
 0x239   :  { %v183_v10 = vmul.f32 %v754_v9, %v169_v49 }
 0x23b   :  { %v192_v14 = vmul.f32 %v604_v11, %v183_v10 }
 0x23c   :  { %v756_v12 = vpop.eup %755 }
 0x23d   :  { %v184_v13 = vmul.f32 %v756_v12, %v170_v53  ;;  %v201_v17 = vadd.f32 %v605_v15, %v192_v14 }
 0x23f   :  { %v193_v16 = vmul.f32 %v604_v11, %v184_v13 }
 0x241   :  { %v202_v18 = vadd.f32 %v605_v15, %v193_v16 }
 0x243   :  { %v203_v19 = vpack.c.bf16 %v202_v18, %v201_v17 }
 0x245   :  { %663 = vmatprep.mubr.bf16.mxu1 %v203_v19  ;;  %681 = vmatprep.mubr.bf16.mxu0 %v203_v19 }
 0x246   :  { %664 = vmatmul.mubr.bf16.vlgmr.msra.gmra.mrb[0].mxu1 %v203_v19  ;;  %682 = vmatmul.mubr.bf16.vlgmr.msra.gmra.mrb[4].mxu0 %v203_v19 }
 0x319   :  { %v518_v31 = vpop.f32.mrb[0].mxu1  ;;  %v561_v32 = vpop.f32.mrb[4].mxu0 }
 0x31a   :  { %v519_v33 = vadd.f32 %v518_v31, %v275_v27  ;;  %v562_v34 = vadd.f32 %v561_v32, %v283_v28  ;;  %v520_v35 = vpop.f32.mrb[1].mxu1  ;;  %v563_v36 = vpop.f32.mrb[5].mxu0 }
 0x31b   :  { %v521_v37 = vadd.f32 %v520_v35, %v279_v29  ;;  %v564_v38 = vadd.f32 %v563_v36, %v287_v30  ;;  %v522_v39 = vpop.f32.mrb[2].mxu1  ;;  %v565_v40 = vpop.f32.mrb[6].mxu0 }
 0x31c   :  { %570 = vst [vmem:[#allocation3] sm:$0xff] %v519_v33  ;;  %572 = vst [vmem:[#allocation3 + $0x10] sm:$0xff] %v562_v34  ;;  %v523_v41 = vadd.f32 %v522_v39, %v275_v27  ;;  %v566_v42 = vadd.f32 %v565_v40, %v283_v28  ;;  %v524_v43 = vpop.f32.mrb[3].mxu1  ;;  %v567_v44 = vpop.f32.mrb[7].mxu0 }
 0x31d   :  { %571 = vst [vmem:[#allocation3 + $0x8] sm:$0xff] %v521_v37  ;;  %573 = vst [vmem:[#allocation3 + $0x18] sm:$0xff] %v564_v38  ;;  %v525_v45 = vadd.f32 %v524_v43, %v279_v29  ;;  %v568_v46 = vadd.f32 %v567_v44, %v287_v30 }
 0x31e   :  { %574 = vst [vmem:[#allocation3 + $0x20] sm:$0xff] %v523_v41  ;;  %576 = vst [vmem:[#allocation3 + $0x30] sm:$0xff] %v566_v42 }
 0x31f   :  { %575 = vst [vmem:[#allocation3 + $0x28] sm:$0xff] %v525_v45  ;;  %577 = vst [vmem:[#allocation3 + $0x38] sm:$0xff] %v568_v46 }
 0x320   :  { %768 = shalt.err (!%p765_p4)
}
 0x321   :  { %s769_s14 = scalar_lea.hbm %s980_s7, 1024 }
 0x322   :  { %p770_p5 = scmp.ne.s32.totalorder %s980_s7, %s769_s14  ;;  %p773_p6 = scmp.lt.u32.totalorder %s769_s14, %s980_s7 }
 0x324   :  { %p775_p7 = pnand %p773_p6, %p770_p5 }
 0x326   :  { %778 = shalt.err (!%p775_p7)
}
 0x327   :  { %s784_s19 = smov 512   ;;  %s785_s20 = smov 32  }
 0x328   :  { %589 = dma.vmem_to_hbm [thread:$0]  %s584_s11, 1024, %s980_s7, [#allocation4], %s784_s19, %s784_s19, %s785_s20  }
 0x329   :  { %779 = dma.done.wait [#allocation4], 1024  }
 0x32a   :  { %780 = vsyncadd [#allocation4], 4294966272 }
 0x32b   :  { %593 = vsyncpa [#allocation4], 1 }

</bundles_post_ra>
